<compile_context>
chip_gen: v5e
topology: v5e:2x2
jax: 0.10.0
libtpu: 0.0.40
codegen_flags: <defaults>
</compile_context>

<pallas_src>
import math

import jax
import jax.numpy as jnp
from jax.experimental import pallas as pl
from jax.experimental.pallas import tpu as pltpu

TAPS = (7, 5, 3)          # kernel sizes of the three Conv1d blocks
BN_EPS = 1e-5             # PyTorch BatchNorm1d default eps
LPAD = 8                  # sublane-aligned interior offset (>= max pad = 3)


# ----------------------------------------------------------------------------
# Fused kernel: (conv1d -> BN(eval) -> ReLU) x 3, all in VMEM.
# Channels-last: x block is (1, T, C); weights are (K, Cin, Cout).
# ----------------------------------------------------------------------------
def _make_fused_kernel(T, C):
    def kernel(x_ref, w7_ref, w5_ref, w3_ref, scale_ref, shift_ref, o_ref, buf):
        # buf: (LPAD + T + LPAD, C) zero-padded activation scratch.
        # Zero everything once; only the interior [LPAD, LPAD+T) is ever
        # rewritten, so the padding rows stay zero for every block.
        buf[...] = jnp.zeros_like(buf)

        scales = scale_ref[...]            # (3, C)  folded BN scale per block
        shifts = shift_ref[...]            # (3, C)  folded BN shift (+conv bias)
        w_refs = (w7_ref, w5_ref, w3_ref)

        h = x_ref[0]                       # (T, C) current activation

        for blk, k_sz in enumerate(TAPS):  # static python loop -> fully unrolled
            pad = k_sz // 2
            buf[LPAD:LPAD + T, :] = h      # aligned interior store
            w = w_refs[blk]                # (k_sz, C, C)
            # K shifted-window matmuls accumulated in f32 (MXU).
            acc = jnp.dot(buf[LPAD - pad:LPAD - pad + T, :], w[0],
                          preferred_element_type=jnp.float32)
            for k in range(1, k_sz):       # static tap loop
                off = LPAD - pad + k
                acc = acc + jnp.dot(buf[off:off + T, :], w[k],
                                    preferred_element_type=jnp.float32)
            # folded BatchNorm (eval) + ReLU
            h = jnp.maximum(acc * scales[blk:blk + 1, :]
                            + shifts[blk:blk + 1, :], 0.0)

        o_ref[0] = h

    return kernel


# ----------------------------------------------------------------------------
# Wrapper: same interface as the PyTorch module, x in NCW layout (B, dims, T).
# One boundary transpose each way (single XLA op, not per-block).
# ----------------------------------------------------------------------------
def conv_layers_forward(params, x):
    B, C, T = x.shape
    x_tc = jnp.transpose(x, (0, 2, 1))                 # (B, T, C) channels-last

    out_tc = pl.pallas_call(
        _make_fused_kernel(T, C),
        grid=(B,),
        in_specs=[
            pl.BlockSpec((1, T, C), lambda b: (b, 0, 0)),
            pl.BlockSpec((TAPS[0], C, C), lambda b: (0, 0, 0)),
            pl.BlockSpec((TAPS[1], C, C), lambda b: (0, 0, 0)),
            pl.BlockSpec((TAPS[2], C, C), lambda b: (0, 0, 0)),
            pl.BlockSpec((len(TAPS), C), lambda b: (0, 0)),
            pl.BlockSpec((len(TAPS), C), lambda b: (0, 0)),
        ],
        out_specs=pl.BlockSpec((1, T, C), lambda b: (b, 0, 0)),
        out_shape=jax.ShapeDtypeStruct((B, T, C), jnp.float32),
        scratch_shapes=[pltpu.VMEM((LPAD + T + LPAD, C), jnp.float32)],
        compiler_params=pltpu.CompilerParams(
            dimension_semantics=("parallel",)),        # shards batch on v7x 2-TC
    )(x_tc, params["w7"], params["w5"], params["w3"],
      params["scale"], params["shift"])

    return jnp.transpose(out_tc, (0, 2, 1))            # back to (B, dims, T)


# ----------------------------------------------------------------------------
# Parameter init (PyTorch-like conv init, non-trivial BN stats) + BN folding.
# ----------------------------------------------------------------------------
def init_params(key, dims):
    keys = iter(jax.random.split(key, 6 * len(TAPS)))
    raw = []
    folded = {}
    scales, shifts = [], []
    for k_sz in TAPS:
        bound = 1.0 / math.sqrt(dims * k_sz)
        # channels-last conv weight: w[k, cin, cout] == torch_weight[cout, cin, k]
        w = jax.random.uniform(next(keys), (k_sz, dims, dims), jnp.float32,
                               minval=-bound, maxval=bound)
        b = jax.random.uniform(next(keys), (dims,), jnp.float32,
                               minval=-bound, maxval=bound)
        gamma = 1.0 + 0.1 * jax.random.normal(next(keys), (dims,), jnp.float32)
        beta = 0.1 * jax.random.normal(next(keys), (dims,), jnp.float32)
        rmean = 0.1 * jax.random.normal(next(keys), (dims,), jnp.float32)
        rvar = 1.0 + 0.1 * jnp.abs(jax.random.normal(next(keys), (dims,),
                                                     jnp.float32))
        scale = gamma / jnp.sqrt(rvar + BN_EPS)
        shift = beta + (b - rmean) * scale             # conv bias folded in
        raw.append(dict(w=w, b=b, gamma=gamma, beta=beta, rm=rmean, rv=rvar))
        folded[f"w{k_sz}"] = w
        scales.append(scale)
        shifts.append(shift)
    folded["scale"] = jnp.stack(scales)                # (3, dims)
    folded["shift"] = jnp.stack(shifts)                # (3, dims)
    return folded, raw


# ----------------------------------------------------------------------------
# Pure-JAX reference (matches PyTorch Conv1d/BatchNorm1d-eval/ReLU semantics).
# ----------------------------------------------------------------------------
def reference_forward(raw, x):
    h = x
    for blk in raw:
        k_sz = blk["w"].shape[0]
        pad = k_sz // 2
        w_oiw = jnp.transpose(blk["w"], (2, 1, 0))     # (Cout, Cin, K), torch layout
        y = jax.lax.conv_general_dilated(
            h, w_oiw, window_strides=(1,), padding=[(pad, pad)],
            dimension_numbers=("NCH", "OIH", "NCH"),
            precision=jax.lax.Precision.HIGHEST)
        y = y + blk["b"][None, :, None]
        y = (y - blk["rm"][None, :, None]) / jnp.sqrt(blk["rv"][None, :, None]
                                                      + BN_EPS)
        y = y * blk["gamma"][None, :, None] + blk["beta"][None, :, None]
        h = jnp.maximum(y, 0.0)
    return h


if __name__ == "__main__":
    B, DIMS, T = 2, 32, 16                             # small shapes, NCW layout
    key = jax.random.PRNGKey(0)
    kp, kx = jax.random.split(key)
    params, raw = init_params(kp, DIMS)
    x = jax.random.normal(kx, (B, DIMS, T), jnp.float32)

    fwd = jax.jit(conv_layers_forward)
    out = fwd(params, x)
    jax.block_until_ready(out)

    assert out.shape == (B, DIMS, T)
    assert bool(jnp.all(jnp.isfinite(out)))

    ref = reference_forward(raw, x)
    max_err = float(jnp.max(jnp.abs(out - ref)))
    # loose-ish tolerance to allow for MXU f32 multi-pass accumulation order
    assert max_err < 5e-3, f"mismatch vs reference: max abs err {max_err}"

    print("KERNEL_OK")
</pallas_src>

<mosaic_0001>
module attributes {stable_mosaic.version = 11 : i64} {
  func.func @kernel(%arg0: i32, %arg1: memref<1x16x32xf32, #tpu.memory_space<vmem>>, %arg2: memref<7x32x32xf32, #tpu.memory_space<vmem>>, %arg3: memref<5x32x32xf32, #tpu.memory_space<vmem>>, %arg4: memref<3x32x32xf32, #tpu.memory_space<vmem>>, %arg5: memref<3x32xf32, #tpu.memory_space<vmem>>, %arg6: memref<3x32xf32, #tpu.memory_space<vmem>>, %arg7: memref<1x16x32xf32, #tpu.memory_space<vmem>>, %arg8: memref<32x32xf32, #tpu.memory_space<vmem>>) attributes {dimension_semantics = [#tpu.dimension_semantics<parallel>], iteration_bounds = array<i64: 2>, scalar_prefetch = 0 : i64, scratch_operands = 1 : i64, tpu.core_type = #tpu.core_type<tc>, window_params = [{transform_indices = @transform_0, window_bounds = array<i64: 1, 16, 32>}, {pipeline_mode = #tpu.pipeline_mode<synchronous>, transform_indices = @transform_1, window_bounds = array<i64: 7, 32, 32>}, {pipeline_mode = #tpu.pipeline_mode<synchronous>, transform_indices = @transform_2, window_bounds = array<i64: 5, 32, 32>}, {pipeline_mode = #tpu.pipeline_mode<synchronous>, transform_indices = @transform_3, window_bounds = array<i64: 3, 32, 32>}, {pipeline_mode = #tpu.pipeline_mode<synchronous>, transform_indices = @transform_4, window_bounds = array<i64: 3, 32>}, {pipeline_mode = #tpu.pipeline_mode<synchronous>, transform_indices = @transform_5, window_bounds = array<i64: 3, 32>}, {transform_indices = @transform_6, window_bounds = array<i64: 1, 16, 32>}]} {
    %cst = arith.constant 0.000000e+00 : f32
    %0 = vector.broadcast %cst : f32 to vector<32x32xf32>
    %c0 = arith.constant 0 : index
    %c0_0 = arith.constant 0 : index
    %1 = vector.load %arg8[%c0, %c0_0] : memref<32x32xf32, #tpu.memory_space<vmem>>, vector<32x32xf32>
    tpu.vector_store %arg8[%c0, %c0_0], %0 {strides = array<i32>} : memref<32x32xf32, #tpu.memory_space<vmem>>, vector<32x32xf32>,
    %c0_1 = arith.constant 0 : index
    %c0_2 = arith.constant 0 : index
    %2 = vector.load %arg5[%c0_1, %c0_2] : memref<3x32xf32, #tpu.memory_space<vmem>>, vector<3x32xf32>
    %c0_3 = arith.constant 0 : index
    %c0_4 = arith.constant 0 : index
    %3 = vector.load %arg6[%c0_3, %c0_4] : memref<3x32xf32, #tpu.memory_space<vmem>>, vector<3x32xf32>
    %c0_5 = arith.constant 0 : index
    %c0_6 = arith.constant 0 : index
    %c0_7 = arith.constant 0 : index
    %4 = vector.load %arg1[%c0_5, %c0_6, %c0_7] : memref<1x16x32xf32, #tpu.memory_space<vmem>>, vector<1x16x32xf32>
    %5 = vector.shape_cast %4 : vector<1x16x32xf32> to vector<16x32xf32>
    %c8 = arith.constant 8 : index
    %c0_8 = arith.constant 0 : index
    %6 = vector.load %arg8[%c8, %c0_8] : memref<32x32xf32, #tpu.memory_space<vmem>>, vector<16x32xf32>
    tpu.vector_store %arg8[%c8, %c0_8], %5 {strides = array<i32>} : memref<32x32xf32, #tpu.memory_space<vmem>>, vector<16x32xf32>,
    %c5 = arith.constant 5 : index
    %c0_9 = arith.constant 0 : index
    %7 = vector.load %arg8[%c5, %c0_9] : memref<32x32xf32, #tpu.memory_space<vmem>>, vector<16x32xf32>
    %c0_10 = arith.constant 0 : index
    %c0_11 = arith.constant 0 : index
    %c0_12 = arith.constant 0 : index
    %8 = vector.load %arg2[%c0_10, %c0_11, %c0_12] : memref<7x32x32xf32, #tpu.memory_space<vmem>>, vector<1x32x32xf32>
    %9 = vector.shape_cast %8 : vector<1x32x32xf32> to vector<32x32xf32>
    %cst_13 = arith.constant dense<0.000000e+00> : vector<16x32xf32>
    %10 = tpu.matmul %7, %9, %cst_13 {dimension_numbers = #tpu.dot_dimension_numbers<[1], [0], [0], [1], [0, 0, 1, 1], [], []>} : vector<16x32xf32>, vector<32x32xf32>, vector<16x32xf32> -> vector<16x32xf32>
    %c6 = arith.constant 6 : index
    %c0_14 = arith.constant 0 : index
    %11 = vector.load %arg8[%c6, %c0_14] : memref<32x32xf32, #tpu.memory_space<vmem>>, vector<16x32xf32>
    %c1 = arith.constant 1 : index
    %c0_15 = arith.constant 0 : index
    %c0_16 = arith.constant 0 : index
    %12 = vector.load %arg2[%c1, %c0_15, %c0_16] : memref<7x32x32xf32, #tpu.memory_space<vmem>>, vector<1x32x32xf32>
    %13 = vector.shape_cast %12 : vector<1x32x32xf32> to vector<32x32xf32>
    %cst_17 = arith.constant dense<0.000000e+00> : vector<16x32xf32>
    %14 = tpu.matmul %11, %13, %cst_17 {dimension_numbers = #tpu.dot_dimension_numbers<[1], [0], [0], [1], [0, 0, 1, 1], [], []>} : vector<16x32xf32>, vector<32x32xf32>, vector<16x32xf32> -> vector<16x32xf32>
    %15 = arith.addf %10, %14 : vector<16x32xf32>
    %c7 = arith.constant 7 : index
    %c0_18 = arith.constant 0 : index
    %16 = vector.load %arg8[%c7, %c0_18] : memref<32x32xf32, #tpu.memory_space<vmem>>, vector<16x32xf32>
    %c2 = arith.constant 2 : index
    %c0_19 = arith.constant 0 : index
    %c0_20 = arith.constant 0 : index
    %17 = vector.load %arg2[%c2, %c0_19, %c0_20] : memref<7x32x32xf32, #tpu.memory_space<vmem>>, vector<1x32x32xf32>
    %18 = vector.shape_cast %17 : vector<1x32x32xf32> to vector<32x32xf32>
    %cst_21 = arith.constant dense<0.000000e+00> : vector<16x32xf32>
    %19 = tpu.matmul %16, %18, %cst_21 {dimension_numbers = #tpu.dot_dimension_numbers<[1], [0], [0], [1], [0, 0, 1, 1], [], []>} : vector<16x32xf32>, vector<32x32xf32>, vector<16x32xf32> -> vector<16x32xf32>
    %20 = arith.addf %15, %19 : vector<16x32xf32>
    %c8_22 = arith.constant 8 : index
    %c0_23 = arith.constant 0 : index
    %21 = vector.load %arg8[%c8_22, %c0_23] : memref<32x32xf32, #tpu.memory_space<vmem>>, vector<16x32xf32>
    %c3 = arith.constant 3 : index
    %c0_24 = arith.constant 0 : index
    %c0_25 = arith.constant 0 : index
    %22 = vector.load %arg2[%c3, %c0_24, %c0_25] : memref<7x32x32xf32, #tpu.memory_space<vmem>>, vector<1x32x32xf32>
    %23 = vector.shape_cast %22 : vector<1x32x32xf32> to vector<32x32xf32>
    %cst_26 = arith.constant dense<0.000000e+00> : vector<16x32xf32>
    %24 = tpu.matmul %21, %23, %cst_26 {dimension_numbers = #tpu.dot_dimension_numbers<[1], [0], [0], [1], [0, 0, 1, 1], [], []>} : vector<16x32xf32>, vector<32x32xf32>, vector<16x32xf32> -> vector<16x32xf32>
    %25 = arith.addf %20, %24 : vector<16x32xf32>
    %c9 = arith.constant 9 : index
    %c0_27 = arith.constant 0 : index
    %26 = vector.load %arg8[%c9, %c0_27] : memref<32x32xf32, #tpu.memory_space<vmem>>, vector<16x32xf32>
    %c4 = arith.constant 4 : index
    %c0_28 = arith.constant 0 : index
    %c0_29 = arith.constant 0 : index
    %27 = vector.load %arg2[%c4, %c0_28, %c0_29] : memref<7x32x32xf32, #tpu.memory_space<vmem>>, vector<1x32x32xf32>
    %28 = vector.shape_cast %27 : vector<1x32x32xf32> to vector<32x32xf32>
    %cst_30 = arith.constant dense<0.000000e+00> : vector<16x32xf32>
    %29 = tpu.matmul %26, %28, %cst_30 {dimension_numbers = #tpu.dot_dimension_numbers<[1], [0], [0], [1], [0, 0, 1, 1], [], []>} : vector<16x32xf32>, vector<32x32xf32>, vector<16x32xf32> -> vector<16x32xf32>
    %30 = arith.addf %25, %29 : vector<16x32xf32>
    %c10 = arith.constant 10 : index
    %c0_31 = arith.constant 0 : index
    %31 = vector.load %arg8[%c10, %c0_31] : memref<32x32xf32, #tpu.memory_space<vmem>>, vector<16x32xf32>
    %c5_32 = arith.constant 5 : index
    %c0_33 = arith.constant 0 : index
    %c0_34 = arith.constant 0 : index
    %32 = vector.load %arg2[%c5_32, %c0_33, %c0_34] : memref<7x32x32xf32, #tpu.memory_space<vmem>>, vector<1x32x32xf32>
    %33 = vector.shape_cast %32 : vector<1x32x32xf32> to vector<32x32xf32>
    %cst_35 = arith.constant dense<0.000000e+00> : vector<16x32xf32>
    %34 = tpu.matmul %31, %33, %cst_35 {dimension_numbers = #tpu.dot_dimension_numbers<[1], [0], [0], [1], [0, 0, 1, 1], [], []>} : vector<16x32xf32>, vector<32x32xf32>, vector<16x32xf32> -> vector<16x32xf32>
    %35 = arith.addf %30, %34 : vector<16x32xf32>
    %c11 = arith.constant 11 : index
    %c0_36 = arith.constant 0 : index
    %36 = vector.load %arg8[%c11, %c0_36] : memref<32x32xf32, #tpu.memory_space<vmem>>, vector<16x32xf32>
    %c6_37 = arith.constant 6 : index
    %c0_38 = arith.constant 0 : index
    %c0_39 = arith.constant 0 : index
    %37 = vector.load %arg2[%c6_37, %c0_38, %c0_39] : memref<7x32x32xf32, #tpu.memory_space<vmem>>, vector<1x32x32xf32>
    %38 = vector.shape_cast %37 : vector<1x32x32xf32> to vector<32x32xf32>
    %cst_40 = arith.constant dense<0.000000e+00> : vector<16x32xf32>
    %39 = tpu.matmul %36, %38, %cst_40 {dimension_numbers = #tpu.dot_dimension_numbers<[1], [0], [0], [1], [0, 0, 1, 1], [], []>} : vector<16x32xf32>, vector<32x32xf32>, vector<16x32xf32> -> vector<16x32xf32>
    %40 = arith.addf %35, %39 : vector<16x32xf32>
    %41 = vector.extract_strided_slice %2 {offsets = [0, 0], sizes = [1, 32], strides = [1, 1]} : vector<3x32xf32> to vector<1x32xf32>
    %42 = vector.broadcast %41 : vector<1x32xf32> to vector<16x32xf32>
    %43 = arith.mulf %40, %42 : vector<16x32xf32>
    %44 = vector.extract_strided_slice %3 {offsets = [0, 0], sizes = [1, 32], strides = [1, 1]} : vector<3x32xf32> to vector<1x32xf32>
    %45 = vector.broadcast %44 : vector<1x32xf32> to vector<16x32xf32>
    %46 = arith.addf %43, %45 : vector<16x32xf32>
    %cst_41 = arith.constant 0.000000e+00 : f32
    %47 = vector.broadcast %cst_41 : f32 to vector<16x32xf32>
    %48 = arith.maximumf %46, %47 : vector<16x32xf32>
    %c8_42 = arith.constant 8 : index
    %c0_43 = arith.constant 0 : index
    %49 = vector.load %arg8[%c8_42, %c0_43] : memref<32x32xf32, #tpu.memory_space<vmem>>, vector<16x32xf32>
    tpu.vector_store %arg8[%c8_42, %c0_43], %48 {strides = array<i32>} : memref<32x32xf32, #tpu.memory_space<vmem>>, vector<16x32xf32>,
    %c6_44 = arith.constant 6 : index
    %c0_45 = arith.constant 0 : index
    %50 = vector.load %arg8[%c6_44, %c0_45] : memref<32x32xf32, #tpu.memory_space<vmem>>, vector<16x32xf32>
    %c0_46 = arith.constant 0 : index
    %c0_47 = arith.constant 0 : index
    %c0_48 = arith.constant 0 : index
    %51 = vector.load %arg3[%c0_46, %c0_47, %c0_48] : memref<5x32x32xf32, #tpu.memory_space<vmem>>, vector<1x32x32xf32>
    %52 = vector.shape_cast %51 : vector<1x32x32xf32> to vector<32x32xf32>
    %cst_49 = arith.constant dense<0.000000e+00> : vector<16x32xf32>
    %53 = tpu.matmul %50, %52, %cst_49 {dimension_numbers = #tpu.dot_dimension_numbers<[1], [0], [0], [1], [0, 0, 1, 1], [], []>} : vector<16x32xf32>, vector<32x32xf32>, vector<16x32xf32> -> vector<16x32xf32>
    %c7_50 = arith.constant 7 : index
    %c0_51 = arith.constant 0 : index
    %54 = vector.load %arg8[%c7_50, %c0_51] : memref<32x32xf32, #tpu.memory_space<vmem>>, vector<16x32xf32>
    %c1_52 = arith.constant 1 : index
    %c0_53 = arith.constant 0 : index
    %c0_54 = arith.constant 0 : index
    %55 = vector.load %arg3[%c1_52, %c0_53, %c0_54] : memref<5x32x32xf32, #tpu.memory_space<vmem>>, vector<1x32x32xf32>
    %56 = vector.shape_cast %55 : vector<1x32x32xf32> to vector<32x32xf32>
    %cst_55 = arith.constant dense<0.000000e+00> : vector<16x32xf32>
    %57 = tpu.matmul %54, %56, %cst_55 {dimension_numbers = #tpu.dot_dimension_numbers<[1], [0], [0], [1], [0, 0, 1, 1], [], []>} : vector<16x32xf32>, vector<32x32xf32>, vector<16x32xf32> -> vector<16x32xf32>
    %58 = arith.addf %53, %57 : vector<16x32xf32>
    %c8_56 = arith.constant 8 : index
    %c0_57 = arith.constant 0 : index
    %59 = vector.load %arg8[%c8_56, %c0_57] : memref<32x32xf32, #tpu.memory_space<vmem>>, vector<16x32xf32>
    %c2_58 = arith.constant 2 : index
    %c0_59 = arith.constant 0 : index
    %c0_60 = arith.constant 0 : index
    %60 = vector.load %arg3[%c2_58, %c0_59, %c0_60] : memref<5x32x32xf32, #tpu.memory_space<vmem>>, vector<1x32x32xf32>
    %61 = vector.shape_cast %60 : vector<1x32x32xf32> to vector<32x32xf32>
    %cst_61 = arith.constant dense<0.000000e+00> : vector<16x32xf32>
    %62 = tpu.matmul %59, %61, %cst_61 {dimension_numbers = #tpu.dot_dimension_numbers<[1], [0], [0], [1], [0, 0, 1, 1], [], []>} : vector<16x32xf32>, vector<32x32xf32>, vector<16x32xf32> -> vector<16x32xf32>
    %63 = arith.addf %58, %62 : vector<16x32xf32>
    %c9_62 = arith.constant 9 : index
    %c0_63 = arith.constant 0 : index
    %64 = vector.load %arg8[%c9_62, %c0_63] : memref<32x32xf32, #tpu.memory_space<vmem>>, vector<16x32xf32>
    %c3_64 = arith.constant 3 : index
    %c0_65 = arith.constant 0 : index
    %c0_66 = arith.constant 0 : index
    %65 = vector.load %arg3[%c3_64, %c0_65, %c0_66] : memref<5x32x32xf32, #tpu.memory_space<vmem>>, vector<1x32x32xf32>
    %66 = vector.shape_cast %65 : vector<1x32x32xf32> to vector<32x32xf32>
    %cst_67 = arith.constant dense<0.000000e+00> : vector<16x32xf32>
    %67 = tpu.matmul %64, %66, %cst_67 {dimension_numbers = #tpu.dot_dimension_numbers<[1], [0], [0], [1], [0, 0, 1, 1], [], []>} : vector<16x32xf32>, vector<32x32xf32>, vector<16x32xf32> -> vector<16x32xf32>
    %68 = arith.addf %63, %67 : vector<16x32xf32>
    %c10_68 = arith.constant 10 : index
    %c0_69 = arith.constant 0 : index
    %69 = vector.load %arg8[%c10_68, %c0_69] : memref<32x32xf32, #tpu.memory_space<vmem>>, vector<16x32xf32>
    %c4_70 = arith.constant 4 : index
    %c0_71 = arith.constant 0 : index
    %c0_72 = arith.constant 0 : index
    %70 = vector.load %arg3[%c4_70, %c0_71, %c0_72] : memref<5x32x32xf32, #tpu.memory_space<vmem>>, vector<1x32x32xf32>
    %71 = vector.shape_cast %70 : vector<1x32x32xf32> to vector<32x32xf32>
    %cst_73 = arith.constant dense<0.000000e+00> : vector<16x32xf32>
    %72 = tpu.matmul %69, %71, %cst_73 {dimension_numbers = #tpu.dot_dimension_numbers<[1], [0], [0], [1], [0, 0, 1, 1], [], []>} : vector<16x32xf32>, vector<32x32xf32>, vector<16x32xf32> -> vector<16x32xf32>
    %73 = arith.addf %68, %72 : vector<16x32xf32>
    %74 = vector.extract_strided_slice %2 {offsets = [1, 0], sizes = [1, 32], strides = [1, 1]} : vector<3x32xf32> to vector<1x32xf32>
    %75 = vector.broadcast %74 : vector<1x32xf32> to vector<16x32xf32>
    %76 = arith.mulf %73, %75 : vector<16x32xf32>
    %77 = vector.extract_strided_slice %3 {offsets = [1, 0], sizes = [1, 32], strides = [1, 1]} : vector<3x32xf32> to vector<1x32xf32>
    %78 = vector.broadcast %77 : vector<1x32xf32> to vector<16x32xf32>
    %79 = arith.addf %76, %78 : vector<16x32xf32>
    %cst_74 = arith.constant 0.000000e+00 : f32
    %80 = vector.broadcast %cst_74 : f32 to vector<16x32xf32>
    %81 = arith.maximumf %79, %80 : vector<16x32xf32>
    %c8_75 = arith.constant 8 : index
    %c0_76 = arith.constant 0 : index
    %82 = vector.load %arg8[%c8_75, %c0_76] : memref<32x32xf32, #tpu.memory_space<vmem>>, vector<16x32xf32>
    tpu.vector_store %arg8[%c8_75, %c0_76], %81 {strides = array<i32>} : memref<32x32xf32, #tpu.memory_space<vmem>>, vector<16x32xf32>,
    %c7_77 = arith.constant 7 : index
    %c0_78 = arith.constant 0 : index
    %83 = vector.load %arg8[%c7_77, %c0_78] : memref<32x32xf32, #tpu.memory_space<vmem>>, vector<16x32xf32>
    %c0_79 = arith.constant 0 : index
    %c0_80 = arith.constant 0 : index
    %c0_81 = arith.constant 0 : index
    %84 = vector.load %arg4[%c0_79, %c0_80, %c0_81] : memref<3x32x32xf32, #tpu.memory_space<vmem>>, vector<1x32x32xf32>
    %85 = vector.shape_cast %84 : vector<1x32x32xf32> to vector<32x32xf32>
    %cst_82 = arith.constant dense<0.000000e+00> : vector<16x32xf32>
    %86 = tpu.matmul %83, %85, %cst_82 {dimension_numbers = #tpu.dot_dimension_numbers<[1], [0], [0], [1], [0, 0, 1, 1], [], []>} : vector<16x32xf32>, vector<32x32xf32>, vector<16x32xf32> -> vector<16x32xf32>
    %c8_83 = arith.constant 8 : index
    %c0_84 = arith.constant 0 : index
    %87 = vector.load %arg8[%c8_83, %c0_84] : memref<32x32xf32, #tpu.memory_space<vmem>>, vector<16x32xf32>
    %c1_85 = arith.constant 1 : index
    %c0_86 = arith.constant 0 : index
    %c0_87 = arith.constant 0 : index
    %88 = vector.load %arg4[%c1_85, %c0_86, %c0_87] : memref<3x32x32xf32, #tpu.memory_space<vmem>>, vector<1x32x32xf32>
    %89 = vector.shape_cast %88 : vector<1x32x32xf32> to vector<32x32xf32>
    %cst_88 = arith.constant dense<0.000000e+00> : vector<16x32xf32>
    %90 = tpu.matmul %87, %89, %cst_88 {dimension_numbers = #tpu.dot_dimension_numbers<[1], [0], [0], [1], [0, 0, 1, 1], [], []>} : vector<16x32xf32>, vector<32x32xf32>, vector<16x32xf32> -> vector<16x32xf32>
    %91 = arith.addf %86, %90 : vector<16x32xf32>
    %c9_89 = arith.constant 9 : index
    %c0_90 = arith.constant 0 : index
    %92 = vector.load %arg8[%c9_89, %c0_90] : memref<32x32xf32, #tpu.memory_space<vmem>>, vector<16x32xf32>
    %c2_91 = arith.constant 2 : index
    %c0_92 = arith.constant 0 : index
    %c0_93 = arith.constant 0 : index
    %93 = vector.load %arg4[%c2_91, %c0_92, %c0_93] : memref<3x32x32xf32, #tpu.memory_space<vmem>>, vector<1x32x32xf32>
    %94 = vector.shape_cast %93 : vector<1x32x32xf32> to vector<32x32xf32>
    %cst_94 = arith.constant dense<0.000000e+00> : vector<16x32xf32>
    %95 = tpu.matmul %92, %94, %cst_94 {dimension_numbers = #tpu.dot_dimension_numbers<[1], [0], [0], [1], [0, 0, 1, 1], [], []>} : vector<16x32xf32>, vector<32x32xf32>, vector<16x32xf32> -> vector<16x32xf32>
    %96 = arith.addf %91, %95 : vector<16x32xf32>
    %97 = vector.extract_strided_slice %2 {offsets = [2, 0], sizes = [1, 32], strides = [1, 1]} : vector<3x32xf32> to vector<1x32xf32>
    %98 = vector.broadcast %97 : vector<1x32xf32> to vector<16x32xf32>
    %99 = arith.mulf %96, %98 : vector<16x32xf32>
    %100 = vector.extract_strided_slice %3 {offsets = [2, 0], sizes = [1, 32], strides = [1, 1]} : vector<3x32xf32> to vector<1x32xf32>
    %101 = vector.broadcast %100 : vector<1x32xf32> to vector<16x32xf32>
    %102 = arith.addf %99, %101 : vector<16x32xf32>
    %cst_95 = arith.constant 0.000000e+00 : f32
    %103 = vector.broadcast %cst_95 : f32 to vector<16x32xf32>
    %104 = arith.maximumf %102, %103 : vector<16x32xf32>
    %c0_96 = arith.constant 0 : index
    %c0_97 = arith.constant 0 : index
    %c0_98 = arith.constant 0 : index
    %105 = vector.load %arg7[%c0_96, %c0_97, %c0_98] : memref<1x16x32xf32, #tpu.memory_space<vmem>>, vector<1x16x32xf32>
    %106 = vector.shape_cast %105 : vector<1x16x32xf32> to vector<16x32xf32>
    %107 = vector.shape_cast %104 : vector<16x32xf32> to vector<1x16x32xf32>
    tpu.vector_store %arg7[%c0_96, %c0_97, %c0_98], %107 {strides = array<i32>} : memref<1x16x32xf32, #tpu.memory_space<vmem>>, vector<1x16x32xf32>,
    return
  }
  func.func @transform_0(%arg0: i32) -> (i32, i32, i32) {
    %c0_i32 = arith.constant 0 : i32
    %c0_i32_0 = arith.constant 0 : i32
    %c0_i32_1 = arith.constant 0 : i32
    return %arg0, %c0_i32, %c0_i32_0 : i32, i32, i32
  }
  func.func @transform_1(%arg0: i32) -> (i32, i32, i32) {
    %c0_i32 = arith.constant 0 : i32
    %c0_i32_0 = arith.constant 0 : i32
    %c0_i32_1 = arith.constant 0 : i32
    %c0_i32_2 = arith.constant 0 : i32
    return %c0_i32, %c0_i32_0, %c0_i32_1 : i32, i32, i32
  }
  func.func @transform_2(%arg0: i32) -> (i32, i32, i32) {
    %c0_i32 = arith.constant 0 : i32
    %c0_i32_0 = arith.constant 0 : i32
    %c0_i32_1 = arith.constant 0 : i32
    %c0_i32_2 = arith.constant 0 : i32
    return %c0_i32, %c0_i32_0, %c0_i32_1 : i32, i32, i32
  }
  func.func @transform_3(%arg0: i32) -> (i32, i32, i32) {
    %c0_i32 = arith.constant 0 : i32
    %c0_i32_0 = arith.constant 0 : i32
    %c0_i32_1 = arith.constant 0 : i32
    %c0_i32_2 = arith.constant 0 : i32
    return %c0_i32, %c0_i32_0, %c0_i32_1 : i32, i32, i32
  }
  func.func @transform_4(%arg0: i32) -> (i32, i32) {
    %c0_i32 = arith.constant 0 : i32
    %c0_i32_0 = arith.constant 0 : i32
    %c0_i32_1 = arith.constant 0 : i32
    return %c0_i32, %c0_i32_0 : i32, i32
  }
  func.func @transform_5(%arg0: i32) -> (i32, i32) {
    %c0_i32 = arith.constant 0 : i32
    %c0_i32_0 = arith.constant 0 : i32
    %c0_i32_1 = arith.constant 0 : i32
    return %c0_i32, %c0_i32_0 : i32, i32
  }
  func.func @transform_6(%arg0: i32) -> (i32, i32, i32) {
    %c0_i32 = arith.constant 0 : i32
    %c0_i32_0 = arith.constant 0 : i32
    %c0_i32_1 = arith.constant 0 : i32
    return %arg0, %c0_i32, %c0_i32_0 : i32, i32, i32
  }
}

</mosaic_0001>

<bundles_post_ra>
// kernel: conv_layers_forward.1
= control target key start
LH: loop header
LB: loop body
LE: loop exit
PB: predicated region body
PF: predicated region fallthrough
CT: control target
= control target key end

     0   :  { %11 = vsyncpa [#allocation4], 0  ;;  %s1793_s0 = inlined_call_operand.hbm [shape: f32[2,16,32], index: 0, kind: input, shape index: {}]   ;;  %s1794_s1 = inlined_call_operand.hbm [shape: f32[7,32,32], index: 1, kind: input, shape index: {}]   ;;  %s1795_s2 = inlined_call_operand.hbm [shape: f32[5,32,32], index: 2, kind: input, shape index: {}]   ;;  %s1796_s3 = inlined_call_operand.hbm [shape: f32[3,32,32], index: 3, kind: input, shape index: {}]   ;;  %s1797_s4 = inlined_call_operand.hbm [shape: f32[3,32], index: 4, kind: input, shape index: {}]   ;;  %s1798_s5 = inlined_call_operand.hbm [shape: f32[3,32], index: 5, kind: input, shape index: {}]   ;;  %s1799_s6 = inlined_call_operand.hbm [shape: f32[2,16,32], index: 6, kind: output, shape index: {}]  }
   0x1   :  { %13 = vsyncpa [#allocation4 + $0x1], 0 }
   0x2   :  { %14 = vsyncpa [#allocation7], 0 }
   0x3   :  { %15 = vsyncpa [#allocation10], 0 }
   0x4   :  { %16 = vsyncpa [#allocation13], 0 }
   0x5   :  { %17 = vsyncpa [#allocation5], 0 }
   0x6   :  { %19 = vsyncpa [#allocation5 + $0x1], 0  ;;  %s1551_s21 = smov 0   ;;  %s1553_s22 = smov 0  }
   0x7   :  { %s1555_s23 = smov 0   ;;  %s1557_s24 = smov 0  }
   0x8 LB: > { %s198_s27 = sshll.u32 %s1794_s1, 4  ;;  %s1575_s28 = sadd.s32 4294967295, %s1504_s24   ;;  %s1504_s24 = sphi %s1557_s24, %s1814_s24   ;;  %s1500_s23 = sphi %s1555_s23, %s1813_s23   ;;  %s1496_s22 = sphi %s1553_s22, %s1812_s22   ;;  %s1492_s21 = sphi %s1551_s21, %s1811_s21   ;;  %s199_s27 = int_to_ptr.hbm [resolvable:$true] %s198_s27 }
   0x9   : > { %p1085_p0 = scmp.ge.s32.totalorder %s1504_s24, 1  ;;  %p46_p1 = scmp.eq.s32.totalorder %s1575_s28, 0 }
   0xa   : > { %p187_p2 = scmp.lt.s32.totalorder %s1504_s24, 3  ;;  %s1506_s30 = smov [#allocation6]  }
   0xb   : > { %s200_s7 = sshll.u32 %s1506_s30, 4  ;;  %s226_s10 = sshll.u32 %s1796_s3, 4  ;;  %s201_s7 = int_to_ptr.vmem [resolvable:$true] %s200_s7  ;;  %s227_s10 = int_to_ptr.hbm [resolvable:$true] %s226_s10 }
   0xc   : > { %p1580_p3 = pnand %p1085_p0, %p187_p2  ;;  %s212_s14 = sshll.u32 %s1795_s2, 4  ;;  %s213_s14 = int_to_ptr.hbm [resolvable:$true] %s212_s14 }
   0xd   : > { %s1507_s15 = smov [#allocation9]   ;;  %s1800_s17 = smov 128  }
   0xe   : > { %p1168_p4 = pneg %p1580_p3  ;;  %s228_s16 = sshll.u32 %s1507_s15, 4  ;;  %s229_s16 = int_to_ptr.vmem [resolvable:$true] %s228_s16 }
   0xf   : > { %s1801_s18 = smov 8   ;;  %s241_s25 = sshll.u32 %s1797_s4, 4  ;;  %s242_s25 = int_to_ptr.hbm [resolvable:$true] %s241_s25 }
  0x10   : > { %p1592_p6 = pnand %p1168_p4, %p46_p1  ;;  %s1510_s26 = smov [#allocation8]  }
  0x11   : > { %s214_s30 = sshll.u32 %s1510_s26, 4  ;;  %s1512_s12 = smov [#allocation12]   ;;  %s215_s30 = int_to_ptr.vmem [resolvable:$true] %s214_s30 }
  0x12   : > { %1171 = dma.hbm_to_vmem [thread:$0]  (!%p1592_p6), %s199_s27, 3584, %s201_s7, [#allocation7], %s1800_s17, %s1800_s17, %s1801_s18  }
  0x13   : > { %1177 = dma.hbm_to_vmem [thread:$0]  (!%p1592_p6), %s227_s10, 1536, %s229_s16, [#allocation10], %s1800_s17, %s1800_s17, %s1801_s18  }
  0x14   : > { %1174 = dma.hbm_to_vmem [thread:$0]  (!%p1592_p6), %s213_s14, 2560, %s215_s30, [#allocation7], %s1800_s17, %s1800_s17, %s1801_s18  }
  0x15   : > { %s1511_s27 = smov [#allocation11]   ;;  %s253_s10 = sshll.u32 %s1798_s5, 4  ;;  %s254_s10 = int_to_ptr.hbm [resolvable:$true] %s253_s10 }
  0x16   : > { %s243_s7 = sshll.u32 %s1511_s27, 4  ;;  %s255_s13 = sshll.u32 %s1512_s12, 4  ;;  %s244_s7 = int_to_ptr.vmem [resolvable:$true] %s243_s7  ;;  %s256_s13 = int_to_ptr.vmem [resolvable:$true] %s255_s13 }
  0x17   : > { %1180 = dma.hbm_to_vmem [thread:$0]  (!%p1592_p6), %s242_s25, 64, %s244_s7, [#allocation10]  }
  0x18   : > { %1183 = dma.hbm_to_vmem [thread:$0]  (!%p1592_p6), %s254_s10, 64, %s256_s13, [#allocation13]  }
  0x19   : > { %s1084_s14 = sadd.s32 4294967294, %s1504_s24   ;;  %s1626_s15 = sadd.s32 1, %s1504_s24  }
  0x1a   : > { %s32_s16 = sadd.s32 1, %s1500_s23  ;;  %s29_s19 = ssub.s32 %s1504_s24, %s1626_s15 }
  0x1b   : > { %p39_p7 = scmp.ne.s32.totalorder %s1500_s23, %s1496_s22  ;;  %p30_p8 = scmp.eq.s32.totalorder %s29_s19, 0 }
  0x1c   : > { %p40_p9 = scmp.eq.s32.totalorder %s1504_s24, 0  ;;  %p45_p10 = scmp.ne.s32.totalorder %s1496_s22, %s1492_s21 }
  0x1d   : > { %p174_p11 = scmp.eq.s32.totalorder %s1575_s28, 1  ;;  %p180_p0 = scmp.eq.s32.totalorder %s1084_s14, 1 }
  0x1e   : > { %s1638_s20 = scalar_select %p30_p8, %s1500_s23, %s32_s16  }
  0x1f   : > { %p1642_p12 = por %p46_p1, %p45_p10  ;;  %p1646_p13 = por %p174_p11, %p39_p7 }
  0x20   : > { %p41_p2 = por %p40_p9, %p39_p7  ;;  %s266_s26 = sand.u32 1, %s1500_s23  }
  0x21   : > { %p1651_p4 = por %p180_p0, %p45_p10  ;;  %p1197_p6 = scmp.lt.s32.totalorder %s1504_s24, 2 }
  0x22   : > { %s1092_s27 = sshll.u32 %s266_s26, 4  ;;  %s1138_s7 = sshll.u32 %s1504_s24, 4 }
  0x23   : > { %s275_s10 = scalar_lea.hbm %s1793_s0, %s1138_s7  ;;  %s270_s13 = scalar_lea.vmem [#allocation3], %s1092_s27 }
  0x24   : > { %s276_s12 = sshll.u32 %s275_s10, 4  ;;  %s278_s16 = sshll.u32 %s270_s13, 4  ;;  %s277_s12 = int_to_ptr.hbm [resolvable:$true] %s276_s12  ;;  %s279_s16 = int_to_ptr.vmem [resolvable:$true] %s278_s16 }
  0x25   : > { %p1660_p8 = pnand %p1197_p6, %p41_p2  ;;  %s267_s19 = scalar_lea.sflag [#allocation4], %s266_s26 }
  0x26   : > { %s1396_s17 = sshra.s32 %s277_s12, 4  ;;  %s1403_s27 = scalar_lea.hbm %s1793_s0, 32  ;;  %s1397_s17 = int_to_ptr.hbm [resolvable:$true] %s1396_s17 }
  0x27   : > { %s1398_s18 = scalar_lea.hbm %s1397_s17, 16  ;;  %p1400_p9 = pneg %p1660_p8 }
  0x28   : > { %p1399_p7 = scmp.ne.s32.totalorder %s1397_s17, %s1398_s18  ;;  %p1404_p0 = scmp.lt.s32.totalorder %s1397_s17, %s1793_s0 }
  0x29   : > { %p1405_p2 = scmp.lt.s32.totalorder %s1403_s27, %s1398_s18 }
  0x2a   : > { %p1401_p10 = pnand %p1400_p9, %p1399_p7 }
  0x2b   : > { %p1406_p6 = por %p1405_p2, %p1404_p0 }
  0x2c   : > { %p1402_p11 = pneg %p1401_p10 }
  0x2e   : > { %p1407_p5 = pnand %p1406_p6, %p1402_p11 }
  0x30   : > { %1410 = shalt.err (!%p1407_p5)
}
  0x31   : > { %s1808_s26 = smov 8   ;;  %s1809_s13 = smov 128  }
  0x32   : > { %1187 = dma.hbm_to_vmem [thread:$0]  (!%p1660_p8), %s277_s12, 256, %s279_s16, %s267_s19, %s1809_s13, %s1809_s13, %s1808_s26  }
  0x33   : > { %290 = sbr.rel (%p1580_p3) target bundleno = 568 (0x238), region = 44  ;;  %s1680_s7 = sand.u32 (!%p1580_p3), 1, %s1496_s22  }
  0x34   : > { %s1096_s17 = sshll.u32 (!%p1580_p3), %s1680_s7, 4  ;;  %s293_s18 = scalar_lea.sflag (!%p1580_p3), [#allocation4], %s1680_s7 }
  0x35   : > { %s1686_s8 = scalar_lea.vmem (!%p1580_p3), [#allocation3], %s1096_s17 }
  0x38   : > { %1471 = dma.done.wait (%p1642_p12), %s293_s18, 256  }
  0x39   : > { %1473 = vsyncadd (%p1642_p12), %s293_s18, 4294967040 }
  0x3a   : > { %1475 = dma.done.wait (%p46_p1), [#allocation7], 6144  }
  0x3b   : > { %1477 = vsyncadd (%p46_p1), [#allocation7], 4294961152 }
  0x3c   : > { %1479 = dma.done.wait (%p46_p1), [#allocation10], 1600  }
  0x3d   : > { %1481 = vsyncadd (%p46_p1), [#allocation10], 4294965696 }
  0x3e   : > { %1483 = dma.done.wait (%p46_p1), [#allocation13], 64  }
  0x3f   : > { %1485 = vsyncadd (%p46_p1), [#allocation13], 4294967232  ;;  %vm351_vm0 = vcmask 261120   ;;  %v1513_v0 = vmov 0.0   ;;  %v374_v1 = vld [vmem:[#allocation6 + $0x38] sm:$0xff]  ;;  %v373_v4 = vld [vmem:[#allocation6 + $0x30] sm:$0xff] }
  0x40   : > { %353 = vst.msk [vmem:[#allocation2 + $0x8] sm:$0xff] %vm351_vm0, %v1513_v0  ;;  %v367_v2 = vld [vmem:[#allocation6 + $0x18] sm:$0xff]  ;;  %1140 = vmatpush.msra.mxu3 %v374_v1  ;;  %v366_v5 = vld [vmem:[#allocation6 + $0x10] sm:$0xff]  ;;  %393 = vmatpush.msra.mxu0 %v374_v1  ;;  %v372_v7 = vld [vmem:[#allocation6 + $0x28] sm:$0xff]  ;;  %s1139_s29 = sshll.u32 %s1575_s28, 4  ;;  %s350_s14 = scalar_lea.vmem [#allocation14], %s1096_s17 }
  0x41   : > { %354 = vst.msk [vmem:[#allocation2 + $0x10] sm:$0xff] %vm351_vm0, %v1513_v0  ;;  %v439_v3 = vld [vmem:[#allocation6 + $0x58] sm:$0xff]  ;;  %422 = vmatpush.msra.mxu1 %v367_v2  ;;  %v438_v6 = vld [vmem:[#allocation6 + $0x50] sm:$0xff]  ;;  %v365_v8 = vld [vmem:[#allocation6 + $0x8] sm:$0xff]  ;;  %s959_s16 = scalar_lea.hbm %s1799_s6, %s1139_s29  ;;  %s960_s19 = sshll.u32 %s350_s14, 4  ;;  %s961_s19 = int_to_ptr.vmem [resolvable:$true] %s960_s19 }
  0x42   : > { %352 = vst.msk [vmem:[#allocation2] sm:$0xff] %vm351_vm0, %v1513_v0  ;;  %458 = vmatpush.msra.mxu2 %v439_v3  ;;  %1141 = vmatpush.msra.mxu3 %v373_v4  ;;  %v437_v9 = vld [vmem:[#allocation6 + $0x48] sm:$0xff]  ;;  %v371_v10 = vld [vmem:[#allocation6 + $0x20] sm:$0xff]  ;;  %v477_v15 = vld [vmem:[#allocation6 + $0x78] sm:$0xff]  ;;  %s962_s27 = sshll.u32 %s959_s16, 4  ;;  %s948_s28 = scalar_lea.sflag [#allocation5], %s1680_s7  ;;  %s963_s27 = int_to_ptr.hbm [resolvable:$true] %s962_s27 }
  0x43   : > { %355 = vst.msk [vmem:[#allocation2 + $0x18] sm:$0xff] %vm351_vm0, %v1513_v0  ;;  %423 = vmatpush.msra.mxu1 %v366_v5  ;;  %394 = vmatpush.msra.mxu0 %v373_v4  ;;  %v364_v11 = vld [vmem:[#allocation6] sm:$0xff]  ;;  %v359_v13 = vld [vmem:[%s1686_s8 + $0x8] sm:$0xff]  ;;  %v476_v17 = vld [vmem:[#allocation6 + $0x70] sm:$0xff]  ;;  %s1440_s9 = sshra.s32 %s963_s27, 4  ;;  %s1446_s17 = scalar_lea.hbm %s1799_s6, 32  ;;  %s1441_s9 = int_to_ptr.hbm [resolvable:$true] %s1440_s9 }
  0x44   : > { %459 = vmatpush.msra.mxu2 %v438_v6  ;;  %v358_v12 = vld [vmem:[%s1686_s8] sm:$0xff]  ;;  %1142 = vmatpush.msra.mxu3 %v372_v7  ;;  %361 = vst.msk [vmem:[#allocation2 + $0x10] sm:$0xff] %vm351_vm0, %v359_v13  ;;  %v591_v16 = vld [vmem:[#allocation6 + $0xd8] sm:$0xff]  ;;  %v475_v21 = vld [vmem:[#allocation6 + $0x68] sm:$0xff]  ;;  %s1442_s10 = scalar_lea.hbm %s1441_s9, 16  ;;  %p1447_p12 = scmp.lt.s32.totalorder %s1441_s9, %s1799_s6 }
  0x45   : > { %424 = vmatpush.msra.mxu1 %v365_v8  ;;  %v436_v14 = vld [vmem:[#allocation6 + $0x40] sm:$0xff]  ;;  %360 = vst.msk [vmem:[#allocation2 + $0x8] sm:$0xff] %vm351_vm0, %v358_v12  ;;  %395 = vmatpush.msra.mxu0 %v372_v7  ;;  %v553_v18 = vld [vmem:[#allocation6 + $0xb8] sm:$0xff]  ;;  %v590_v19 = vld [vmem:[#allocation6 + $0xd0] sm:$0xff]  ;;  %p1443_p1 = scmp.ne.s32.totalorder %s1441_s9, %s1442_s10  ;;  %p1448_p8 = scmp.lt.s32.totalorder %s1446_s17, %s1442_s10 }
  0x46   : > { %460 = vmatpush.msra.mxu2 %v437_v9  ;;  %1143 = vmatpush.msra.mxu3 %v371_v10  ;;  %v515_v20 = vld [vmem:[#allocation6 + $0x98] sm:$0xff]  ;;  %v552_v22 = vld [vmem:[#allocation6 + $0xb0] sm:$0xff]  ;;  %v474_v23 = vld [vmem:[#allocation6 + $0x60] sm:$0xff] }
  0x47   : > { %425 = vmatpush.msra.mxu1 %v364_v11  ;;  %396 = vmatpush.msra.mxu0 %v371_v10  ;;  %v589_v24 = vld [vmem:[#allocation6 + $0xc8] sm:$0xff]  ;;  %v514_v29 = vld [vmem:[#allocation6 + $0x90] sm:$0xff]  ;;  %v588_v31 = vld [vmem:[#allocation6 + $0xc0] sm:$0xff]  ;;  %p1444_p3 = pnand %p1443_p1, %p1646_p13  ;;  %p1449_p7 = por %p1448_p8, %p1447_p12 }
  0x48   : > { %461 = vmatpush.msra.mxu2 %v436_v14  ;;  %496 = vmatpush.msrb.mxu3 %v477_v15  ;;  %v551_v30 = vld [vmem:[#allocation6 + $0xa8] sm:$0xff]  ;;  %v550_v33 = vld [vmem:[#allocation6 + $0xa0] sm:$0xff]  ;;  %v645_v45 = vld [vmem:[#allocation8 + $0x38] sm:$0xff] }
  0x49   : > { %572 = vmatpush.msrb.mxu1 %v553_v18  ;;  %534 = vmatpush.msrb.mxu0 %v515_v20  ;;  %v513_v32 = vld [vmem:[#allocation6 + $0x88] sm:$0xff]  ;;  %v512_v34 = vld [vmem:[#allocation6 + $0x80] sm:$0xff]  ;;  %v644_v46 = vld [vmem:[#allocation8 + $0x30] sm:$0xff]  ;;  %p1445_p5 = pneg %p1444_p3 }
  0x4a   : > { %610 = vmatpush.msrb.mxu2 %v591_v16  ;;  %497 = vmatpush.msrb.mxu3 %v476_v17  ;;  %v638_v48 = vld [vmem:[#allocation8 + $0x18] sm:$0xff]  ;;  %v637_v50 = vld [vmem:[#allocation8 + $0x10] sm:$0xff]  ;;  %v643_v52 = vld [vmem:[#allocation8 + $0x28] sm:$0xff] }
  0x4b   : > { %573 = vmatpush.msrb.mxu1 %v552_v22  ;;  %535 = vmatpush.msrb.mxu0 %v514_v29  ;;  %v472_v41 = vld [vmem:[#allocation2 + $0x10] sm:$0xff]  ;;  %v710_v49 = vld [vmem:[#allocation8 + $0x58] sm:$0xff]  ;;  %v636_v53 = vld [vmem:[#allocation8 + $0x8] sm:$0xff]  ;;  %p1450_p9 = pnand %p1449_p7, %p1445_p5 }
  0x4c   : > { %611 = vmatpush.msrb.mxu2 %v590_v19  ;;  %v362_v25 = vld [vmem:[#allocation2 + $0x5] sm:$0xff]  ;;  %498 = vmatpush.msrb.mxu3 %v475_v21  ;;  %v369_v28 = vld [vmem:[#allocation2 + $0xe] sm:$0xff]  ;;  %v748_v61 = vld [vmem:[#allocation8 + $0x78] sm:$0xff] }
  0x4d   : > { %v433_v26 = vld [vmem:[#allocation2 + $0x7] sm:$0xff]  ;;  %1105 = vmatmul.msk.f32.vlgmr.msra.gmra.mxu1 %vm351_vm0, %v362_v25  ;;  %1104 = vmatmul.msk.f32.vlgmr.msra.gmra.mxu3 %vm351_vm0, %v369_v28  ;;  %v434_v36 = vld [vmem:[#allocation2 + $0xf] sm:$0xff]  ;;  %v786_v63 = vld [vmem:[#allocation8 + $0x98] sm:$0xff] }
  0x4e   : > { %v368_v27 = vld [vmem:[#allocation2 + $0x6] sm:$0xff]  ;;  %1107 = vmatmul.msk.f32.vlgmr.msra.gmra.mxu2 %vm351_vm0, %v433_v26  ;;  %499 = vmatpush.msrb.mxu3 %v474_v23  ;;  %v510_v42 = vld [vmem:[#allocation2 + $0x11] sm:$0xff]  ;;  %v1726_v14 = vld [vmem:[#allocation11] sm:$0x7] }
  0x4f   : > { %1103 = vmatmul.msk.f32.vlgmr.msra.gmra.mxu0 %vm351_vm0, %v368_v27  ;;  %612 = vmatpush.msrb.mxu2 %v589_v24  ;;  %v363_v35 = vld [vmem:[#allocation2 + $0xd] sm:$0xff]  ;;  %v642_v57 = vld [vmem:[#allocation8 + $0x20] sm:$0xff]  ;;  %v623_v18 = vperm.slane %v1726_v14, 0 }
  0x50   : > { %574 = vmatpush.msrb.mxu1 %v551_v30  ;;  %536 = vmatpush.msrb.mxu0 %v513_v32  ;;  %v471_v37 = vld [vmem:[#allocation2 + $0x8] sm:$0xff]  ;;  %v586_v43 = vld [vmem:[#allocation2 + $0x13] sm:$0xff]  ;;  %v635_v58 = vld [vmem:[#allocation8] sm:$0xff] }
  0x51   : > { %613 = vmatpush.msrb.mxu2 %v588_v31  ;;  %v509_v38 = vld [vmem:[#allocation2 + $0x9] sm:$0xff]  ;;  %v548_v44 = vld [vmem:[#allocation2 + $0x12] sm:$0xff]  ;;  %664 = vmatpush.msra.mxu3 %v645_v45  ;;  %v707_v59 = vld [vmem:[#allocation8 + $0x40] sm:$0xff] }
  0x52   : > { %575 = vmatpush.msrb.mxu1 %v550_v33  ;;  %537 = vmatpush.msrb.mxu0 %v512_v34  ;;  %v585_v39 = vld [vmem:[#allocation2 + $0xb] sm:$0xff]  ;;  %v745_v4 = vld [vmem:[#allocation8 + $0x60] sm:$0xff] }
  0x53   : > { %v547_v40 = vld [vmem:[#allocation2 + $0xa] sm:$0xff]  ;;  %665 = vmatpush.msra.mxu3 %v644_v46  ;;  %767 = vmatpush.msra.mxu2 %v748_v61  ;;  %v783_v12 = vld [vmem:[#allocation8 + $0x80] sm:$0xff] }
  0x54   : > { %693 = vmatpush.msra.mxu0 %v638_v48  ;;  %729 = vmatpush.msra.mxu1 %v710_v49  ;;  %v709_v51 = vld [vmem:[#allocation8 + $0x50] sm:$0xff]  ;;  %v708_v54 = vld [vmem:[#allocation8 + $0x48] sm:$0xff]  ;;  %v1728_v16 = vld [vmem:[#allocation12] sm:$0x7] }
  0x55   : > { %1106 = vmatmul.msk.f32.gmra.mxu1 %vm351_vm0, %v363_v35  ;;  %1109 = vmatmul.msk.f32.vlgmr.msrb.gmra.mxu3 %vm351_vm0, %v471_v37  ;;  %v747_v0 = vld [vmem:[#allocation8 + $0x70] sm:$0xff]  ;;  %v746_v2 = vld [vmem:[#allocation8 + $0x68] sm:$0xff]  ;;  %v626_v23 = vperm.slane %v1728_v16, 0  ;;  %v833_v48 = vld [vmem:[#allocation9 + $0x18] sm:$0xff] }
  0x56   : > { %1108 = vmatmul.msk.f32.gmra.mxu2 %vm351_vm0, %v434_v36  ;;  %694 = vmatpush.msra.mxu0 %v637_v50  ;;  %v785_v1 = vld [vmem:[#allocation8 + $0x90] sm:$0xff]  ;;  %v784_v11 = vld [vmem:[#allocation8 + $0x88] sm:$0xff] }
  0x57   : > { %1111 = vmatmul.msk.f32.vlgmr.msrb.gmra.mxu0 %vm351_vm0, %v509_v38  ;;  %730 = vmatpush.msra.mxu1 %v709_v51  ;;  %v839_v49 = vld [vmem:[#allocation9 + $0x30] sm:$0xff]  ;;  %v838_v51 = vld [vmem:[#allocation9 + $0x28] sm:$0xff] }
  0x58   : > { %666 = vmatpush.msra.mxu3 %v643_v52  ;;  %695 = vmatpush.msra.mxu0 %v636_v53  ;;  %v832_v50 = vld [vmem:[#allocation9 + $0x10] sm:$0xff]  ;;  %v831_v52 = vld [vmem:[#allocation9 + $0x8] sm:$0xff] }
  0x59   : > { %731 = vmatpush.msra.mxu1 %v708_v54  ;;  %768 = vmatpush.msra.mxu2 %v747_v0  ;;  %v905_v54 = vld [vmem:[#allocation9 + $0x58] sm:$0xff] }
  0x5a   : > { %667 = vmatpush.msra.mxu3 %v642_v57  ;;  %696 = vmatpush.msra.mxu0 %v635_v58  ;;  %v830_v57 = vld [vmem:[#allocation9] sm:$0xff]  ;;  %v903_v58 = vld [vmem:[#allocation9 + $0x48] sm:$0xff] }
  0x5b   : > { %732 = vmatpush.msra.mxu1 %v707_v59  ;;  %769 = vmatpush.msra.mxu2 %v746_v2  ;;  %v902_v59 = vld [vmem:[#allocation9 + $0x40] sm:$0xff] }
  0x5c   : > { %805 = vmatpush.msrb.mxu3 %v786_v63 }
  0x5d   : > { %1113 = vmatmul.msk.f32.vlgmr.msrb.gmra.mxu1 %vm351_vm0, %v547_v40  ;;  %1110 = vmatmul.msk.f32.gmra.mxu3 %vm351_vm0, %v472_v41 }
  0x5e   : > { %1115 = vmatmul.msk.f32.vlgmr.msrb.gmra.mxu2 %vm351_vm0, %v585_v39  ;;  %806 = vmatpush.msrb.mxu3 %v785_v1 }
  0x5f   : > { %1112 = vmatmul.msk.f32.gmra.mxu0 %vm351_vm0, %v510_v42  ;;  %770 = vmatpush.msra.mxu2 %v745_v4 }
  0x60   : > { %807 = vmatpush.msrb.mxu3 %v784_v11  ;;  %888 = vmatpush.msrb.mxu1 %v833_v48 }
  0x61   : > { %924 = vmatpush.msrb.mxu2 %v905_v54 }
  0x62   : > { %808 = vmatpush.msrb.mxu3 %v783_v12  ;;  %889 = vmatpush.msrb.mxu1 %v832_v50 }
  0x64   : > { %890 = vmatpush.msrb.mxu1 %v831_v52 }
  0x65   : > { %1114 = vmatmul.msk.f32.gmra.mxu1 %vm351_vm0, %v548_v44 }
  0x66   : > { %1116 = vmatmul.msk.f32.gmra.mxu2 %vm351_vm0, %v586_v43  ;;  %891 = vmatpush.msrb.mxu1 %v830_v57 }
  0xca   : > { %v427_v47 = vpop.f32.mrf.mxu1 }
  0xcc   : > { %v398_v55 = vpop.f32.mrf.mxu0 }
  0xcd   : > { %v428_v3 = vadd.f32 %v427_v47, %v398_v55  ;;  %v840_v47 = vld [vmem:[#allocation9 + $0x38] sm:$0xff]  ;;  %v904_v55 = vld [vmem:[#allocation9 + $0x50] sm:$0xff] }
  0xce   : > { %859 = vmatpush.msrb.mxu0 %v840_v47  ;;  %925 = vmatpush.msrb.mxu2 %v904_v55 }
  0xd0   : > { %v401_v60 = vpop.f32.mrf.mxu3  ;;  %860 = vmatpush.msrb.mxu0 %v839_v49  ;;  %926 = vmatpush.msrb.mxu2 %v903_v58 }
  0xd1   : > { %v463_v56 = vpop.f32.mrf.mxu2 }
  0xd2   : > { %v430_v62 = vpop.f32.mrf.mxu1  ;;  %v469_v6 = vadd.f32 %v463_v56, %v428_v3  ;;  %861 = vmatpush.msrb.mxu0 %v838_v51  ;;  %v837_v56 = vld [vmem:[#allocation9 + $0x20] sm:$0xff]  ;;  %927 = vmatpush.msrb.mxu2 %v902_v59  ;;  %v818_v3 = vperm.slane %v1726_v14, 1 }
  0xd3   : > { %v431_v15 = vadd.f32 %v430_v62, %v401_v60 }
  0xd4   : > { %v539_v5 = vpop.f32.mrf.mxu0  ;;  %862 = vmatpush.msrb.mxu0 %v837_v56 }
  0xd8   : > { %v501_v8 = vpop.f32.mrf.mxu3 }
  0xd9   : > { %v466_v7 = vpop.f32.mrf.mxu2  ;;  %v507_v9 = vadd.f32 %v501_v8, %v469_v6  ;;  %v821_v8 = vperm.slane %v1728_v16, 1 }
  0xda   : > { %v577_v10 = vpop.f32.mrf.mxu1  ;;  %v470_v19 = vadd.f32 %v466_v7, %v431_v15 }
  0xdb   : > { %v545_v13 = vadd.f32 %v539_v5, %v507_v9 }
  0xdc   : > { %v542_v24 = vpop.f32.mrf.mxu0 }
  0xdd   : > { %v583_v17 = vadd.f32 %v577_v10, %v545_v13 }
  0xe0   : > { %v504_v21 = vpop.f32.mrf.mxu3 }
  0xe1   : > { %v615_v20 = vpop.f32.mrf.mxu2  ;;  %v508_v25 = vadd.f32 %v504_v21, %v470_v19 }
  0xe2   : > { %v621_v22 = vadd.f32 %v615_v20, %v583_v17  ;;  %v580_v28 = vpop.f32.mrf.mxu1 }
  0xe3   : > { %v546_v27 = vadd.f32 %v542_v24, %v508_v25 }
  0xe4   : > { %v624_v26 = vmul.f32 %v623_v18, %v621_v22 }
  0xe5   : > { %v584_v31 = vadd.f32 %v580_v28, %v546_v27 }
  0xe6   : > { %v627_v29 = vadd.f32 %v626_v23, %v624_v26 }
  0xe8   : > { %v629_v30 = vmax.f32 %v627_v29, 0.0 }
  0xe9   : > { %v618_v32 = vpop.f32.mrf.mxu2 }
  0xea   : > { %631 = vst.msk [vmem:[#allocation2 + $0x8] sm:$0xff] %vm351_vm0, %v629_v30  ;;  %v622_v33 = vadd.f32 %v618_v32, %v584_v31  ;;  %v937_v32 = vperm.slane %v1726_v14, 2 }
  0xec   : > { %v625_v34 = vmul.f32 %v623_v18, %v622_v33 }
  0xee   : > { %v628_v35 = vadd.f32 %v626_v23, %v625_v34 }
  0xf0   : > { %v630_v36 = vmax.f32 %v628_v35, 0.0  ;;  %v940_v35 = vperm.slane %v1728_v16, 2 }
  0xf1   : > { %v639_v37 = vld [vmem:[#allocation2 + $0x7] sm:$0xff] }
  0xf2   : > { %v633_v38 = vld [vmem:[#allocation2 + $0x6] sm:$0xff]  ;;  %632 = vst.msk [vmem:[#allocation2 + $0x10] sm:$0xff] %vm351_vm0, %v630_v36  ;;  %1117 = vmatmul.msk.f32.vlgmr.msra.gmra.mxu3 %vm351_vm0, %v639_v37 }
  0xf3   : > { %v704_v39 = vld [vmem:[#allocation2 + $0x8] sm:$0xff]  ;;  %1119 = vmatmul.msk.f32.vlgmr.msra.gmra.mxu0 %vm351_vm0, %v633_v38 }
  0xf4   : > { %1121 = vmatmul.msk.f32.vlgmr.msra.gmra.mxu1 %vm351_vm0, %v704_v39 }
  0xf9   : > { %v640_v40 = vld [vmem:[#allocation2 + $0xf] sm:$0xff] }
  0xfa   : > { %v634_v41 = vld [vmem:[#allocation2 + $0xe] sm:$0xff]  ;;  %1118 = vmatmul.msk.f32.gmra.mxu3 %vm351_vm0, %v640_v40 }
  0xfb   : > { %v705_v42 = vld [vmem:[#allocation2 + $0x10] sm:$0xff]  ;;  %1120 = vmatmul.msk.f32.gmra.mxu0 %vm351_vm0, %v634_v41 }
  0xfc   : > { %v742_v43 = vld [vmem:[#allocation2 + $0x9] sm:$0xff]  ;;  %1122 = vmatmul.msk.f32.gmra.mxu1 %vm351_vm0, %v705_v42  ;;  %v743_v45 = vld [vmem:[#allocation2 + $0x11] sm:$0xff] }
  0xfd   : > { %1123 = vmatmul.msk.f32.vlgmr.msra.gmra.mxu2 %vm351_vm0, %v742_v43  ;;  %v780_v44 = vld [vmem:[#allocation2 + $0xa] sm:$0xff]  ;;  %v781_v46 = vld [vmem:[#allocation2 + $0x12] sm:$0xff] }
 0x102   : > { %1125 = vmatmul.msk.f32.vlgmr.msrb.gmra.mxu3 %vm351_vm0, %v780_v44 }
 0x105   : > { %1124 = vmatmul.msk.f32.gmra.mxu2 %vm351_vm0, %v743_v45 }
 0x10a   : > { %1126 = vmatmul.msk.f32.gmra.mxu3 %vm351_vm0, %v781_v46 }
 0x170   : > { %v698_v60 = vpop.f32.mrf.mxu0 }
 0x171   : > { %v734_v63 = vpop.f32.mrf.mxu1 }
 0x175   : > { %v669_v53 = vpop.f32.mrf.mxu3 }
 0x176   : > { %v699_v62 = vadd.f32 %v698_v60, %v669_v53 }
 0x178   : > { %v740_v1 = vadd.f32 %v734_v63, %v699_v62  ;;  %v701_v4 = vpop.f32.mrf.mxu0 }
 0x179   : > { %v737_v10 = vpop.f32.mrf.mxu1 }
 0x17d   : > { %v672_v61 = vpop.f32.mrf.mxu3 }
 0x17e   : > { %v702_v6 = vadd.f32 %v701_v4, %v672_v61 }
 0x180   : > { %v772_v0 = vpop.f32.mrf.mxu2  ;;  %v741_v12 = vadd.f32 %v737_v10, %v702_v6 }
 0x181   : > { %v778_v2 = vadd.f32 %v772_v0, %v740_v1 }
 0x185   : > { %v810_v5 = vpop.f32.mrf.mxu3 }
 0x186   : > { %v816_v7 = vadd.f32 %v810_v5, %v778_v2 }
 0x188   : > { %v819_v9 = vmul.f32 %v818_v3, %v816_v7  ;;  %v775_v11 = vpop.f32.mrf.mxu2 }
 0x189   : > { %v779_v15 = vadd.f32 %v775_v11, %v741_v12 }
 0x18a   : > { %v822_v13 = vadd.f32 %v821_v8, %v819_v9 }
 0x18c   : > { %v824_v17 = vmax.f32 %v822_v13, 0.0 }
 0x18d   : > { %v813_v18 = vpop.f32.mrf.mxu3 }
 0x18e   : > { %826 = vst.msk [vmem:[#allocation2 + $0x8] sm:$0xff] %vm351_vm0, %v824_v17  ;;  %v817_v19 = vadd.f32 %v813_v18, %v779_v15 }
 0x190   : > { %v820_v20 = vmul.f32 %v818_v3, %v817_v19 }
 0x192   : > { %v823_v21 = vadd.f32 %v821_v8, %v820_v20 }
 0x194   : > { %v825_v22 = vmax.f32 %v823_v21, 0.0 }
 0x195   : > { %v834_v23 = vld [vmem:[#allocation2 + $0x8] sm:$0xff] }
 0x196   : > { %v828_v24 = vld [vmem:[#allocation2 + $0x7] sm:$0xff]  ;;  %827 = vst.msk [vmem:[#allocation2 + $0x10] sm:$0xff] %vm351_vm0, %v825_v22  ;;  %1127 = vmatmul.msk.f32.vlgmr.msrb.gmra.mxu0 %vm351_vm0, %v834_v23 }
 0x197   : > { %1129 = vmatmul.msk.f32.vlgmr.msrb.gmra.mxu1 %vm351_vm0, %v828_v24 }
 0x19d   : > { %v835_v25 = vld [vmem:[#allocation2 + $0x10] sm:$0xff] }
 0x19e   : > { %v829_v26 = vld [vmem:[#allocation2 + $0xf] sm:$0xff]  ;;  %1128 = vmatmul.msk.f32.gmra.mxu0 %vm351_vm0, %v835_v25 }
 0x19f   : > { %v899_v27 = vld [vmem:[#allocation2 + $0x9] sm:$0xff]  ;;  %1130 = vmatmul.msk.f32.gmra.mxu1 %vm351_vm0, %v829_v26  ;;  %v900_v28 = vld [vmem:[#allocation2 + $0x11] sm:$0xff] }
 0x1a0   : > { %1131 = vmatmul.msk.f32.vlgmr.msrb.gmra.mxu2 %vm351_vm0, %v899_v27 }
 0x1a8   : > { %1132 = vmatmul.msk.f32.gmra.mxu2 %vm351_vm0, %v900_v28 }
 0x213   : > { %v864_v29 = vpop.f32.mrf.mxu0 }
 0x214   : > { %v893_v30 = vpop.f32.mrf.mxu1 }
 0x215   : > { %v894_v31 = vadd.f32 %v893_v30, %v864_v29 }
 0x21b   : > { %v867_v37 = vpop.f32.mrf.mxu0 }
 0x21c   : > { %v896_v38 = vpop.f32.mrf.mxu1 }
 0x21d   : > { %v897_v40 = vadd.f32 %v896_v38, %v867_v37 }
 0x223   : > { %v929_v33 = vpop.f32.mrf.mxu2 }
 0x224   : > { %v935_v34 = vadd.f32 %v929_v33, %v894_v31 }
 0x226   : > { %v938_v36 = vmul.f32 %v937_v32, %v935_v34 }
 0x228   : > { %v941_v39 = vadd.f32 %v940_v35, %v938_v36 }
 0x22a   : > { %v943_v41 = vmax.f32 %v941_v39, 0.0 }
 0x22b   : > { %v932_v42 = vpop.f32.mrf.mxu2 }
 0x22c   : > { %945 = vst.msk [vmem:[%s350_s14] sm:$0xff] %vm351_vm0, %v943_v41  ;;  %v936_v14 = vadd.f32 %v932_v42, %v897_v40 }
 0x22e   : > { %v939_v16 = vmul.f32 %v937_v32, %v936_v14 }
 0x230   : > { %v942_v43 = vadd.f32 %v940_v35, %v939_v16 }
 0x232   : > { %v944_v44 = vmax.f32 %v942_v43, 0.0 }
 0x234   : > { %946 = vst.msk [vmem:[%s350_s14 + $0x8] sm:$0xff] %vm351_vm0, %v944_v44 }
 0x235   : > { %1453 = shalt.err (!%p1450_p9)
}
 0x236   : > { %s1514_s7 = smov 128   ;;  %s1515_s29 = smov 8  }
 0x237   : > { %1166 = dma.vmem_to_hbm [thread:$0]  (%p1646_p13), %s961_s19, 256, %s963_s27, %s948_s28, %s1514_s7, %s1514_s7, %s1515_s29  }
 0x238 PF: > { %s977_s11 = sand.u32 1, %s1492_s21   ;;  %p1810_p10 = scmp.ge.s32.totalorder %s1504_s24, 2 }
 0x239   : > { %s978_s12 = scalar_lea.sflag [#allocation5], %s977_s11 }
 0x23a   : > { %p1189_p11 = pnand %p1810_p10, %p1651_p4 }
 0x23c   : > { %p1190_p0 = pneg %p1189_p11 }
 0x23e   : > { %1487 = dma.done.wait (%p1190_p0), %s978_s12, 256  }
 0x23f   : > { %1489 = vsyncadd (%p1190_p0), %s978_s12, 4294967040  ;;  %p22_p2 = scmp.ge.s32.totalorder %s1626_s15, 4   ;;  %s1811_s21 = smov %s1496_s22 }
 0x240   : > { %s1812_s22 = smov %s1500_s23  ;;  %s1813_s23 = smov %s1638_s20 }
 0x241   : > { %s1814_s24 = smov %s1626_s15  ;;  %24 = sbr.rel (!%p22_p2) target bundleno = 8 (0x8), region = 121 }
 0x246   :  { %984 = vsyncpa [#allocation4], 1 }
 0x247   :  { %986 = vsyncpa [#allocation4 + $0x1], 1 }
 0x248   :  { %987 = vsyncpa [#allocation7], 1 }
 0x249   :  { %988 = vsyncpa [#allocation10], 1 }
 0x24a   :  { %989 = vsyncpa [#allocation13], 1 }
 0x24b   :  { %990 = vsyncpa [#allocation5], 1 }
 0x24c   :  { %992 = vsyncpa [#allocation5 + $0x1], 1 }

</bundles_post_ra>
